<compile_context>
chip_gen: v5e
topology: v5e:2x2
jax: 0.10.0
libtpu: 0.0.40
codegen_flags: <defaults>
</compile_context>

<pallas_src>
import functools
import operator

import jax
import jax.numpy as jnp
from jax.experimental import pallas as pl
from jax.experimental.pallas import tpu as pltpu


# ----------------------------- Pallas kernel --------------------------------

def _layernorm_kernel(x_ref, w_ref, b_ref, o_ref):
    # x: (tm, C)   w, b: (1, C)   o: (tm, C)
    x = x_ref[...].astype(jnp.float32)
    mu = jnp.mean(x, axis=-1, keepdims=True)
    xc = x - mu
    var = jnp.mean(xc * xc, axis=-1, keepdims=True)            # unbiased=False
    inv = jax.lax.rsqrt(var + 1e-5)                            # EUP, not VALU div
    w = w_ref[...].astype(jnp.float32)
    b = b_ref[...].astype(jnp.float32)
    o_ref[...] = (xc * inv * w + b).astype(o_ref.dtype)


def _pick_row_tile(m, target):
    """Largest multiple-of-8 divisor of m that is <= target (else full m)."""
    t = min(target, m)
    t -= t % 8
    while t >= 8:
        if m % t == 0:
            return t
        t -= 8
    return m  # single block covering all rows (always a legal block shape)


def withbias_layernorm(x, weight, bias, *, block_rows=512):
    """LayerNorm over the last axis with affine weight/bias (torch WithBias)."""
    orig_shape = x.shape
    c = orig_shape[-1]
    m = functools.reduce(operator.mul, orig_shape[:-1], 1)
    x2 = x.reshape(m, c)

    tm = _pick_row_tile(m, block_rows)
    grid = (m // tm,)

    out = pl.pallas_call(
        _layernorm_kernel,
        out_shape=jax.ShapeDtypeStruct((m, c), x.dtype),
        grid=grid,
        in_specs=[
            pl.BlockSpec((tm, c), lambda i: (i, 0)),   # activation tile
            pl.BlockSpec((1, c), lambda i: (0, 0)),    # weight (resident)
            pl.BlockSpec((1, c), lambda i: (0, 0)),    # bias (resident)
        ],
        out_specs=pl.BlockSpec((tm, c), lambda i: (i, 0)),
        compiler_params=pltpu.CompilerParams(
            dimension_semantics=("parallel",)),
    )(x2, weight.reshape(1, c), bias.reshape(1, c))

    return out.reshape(orig_shape)


# ----------------------------- pure-JAX reference ----------------------------

def reference(x, weight, bias):
    mu = jnp.mean(x, axis=-1, keepdims=True)
    var = jnp.mean((x - mu) ** 2, axis=-1, keepdims=True)
    return (x - mu) / jnp.sqrt(var + 1e-5) * weight + bias


# ----------------------------- main ------------------------------------------

if __name__ == "__main__":
    # Typical use of WithBias_LayerNorm is on (batch, tokens, channels).
    B, N, C = 2, 64, 128
    key = jax.random.PRNGKey(0)
    kx, kw, kb = jax.random.split(key, 3)
    x = jax.random.normal(kx, (B, N, C), jnp.float32)
    # Module initializes weight=ones, bias=zeros; random values exercise the
    # affine path while keeping the same forward semantics.
    weight = 1.0 + 0.1 * jax.random.normal(kw, (C,), jnp.float32)
    bias = 0.1 * jax.random.normal(kb, (C,), jnp.float32)

    out = withbias_layernorm(x, weight, bias)
    out = jax.block_until_ready(out)

    ref = reference(x, weight, bias)
    assert out.shape == x.shape
    assert bool(jnp.allclose(out, ref, rtol=1e-5, atol=1e-5)), \
        float(jnp.max(jnp.abs(out - ref)))
    print("KERNEL_OK")
</pallas_src>

<mosaic_0001>
module attributes {stable_mosaic.version = 11 : i64} {
  func.func @_layernorm_kernel(%arg0: i32, %arg1: memref<128x128xf32, #tpu.memory_space<vmem>>, %arg2: memref<1x128xf32, #tpu.memory_space<vmem>>, %arg3: memref<1x128xf32, #tpu.memory_space<vmem>>, %arg4: memref<128x128xf32, #tpu.memory_space<vmem>>) attributes {dimension_semantics = [#tpu.dimension_semantics<parallel>], iteration_bounds = array<i64: 1>, scalar_prefetch = 0 : i64, scratch_operands = 0 : i64, tpu.core_type = #tpu.core_type<tc>, window_params = [{transform_indices = @transform_0, window_bounds = array<i64: 128, 128>}, {pipeline_mode = #tpu.pipeline_mode<synchronous>, transform_indices = @transform_1, window_bounds = array<i64: 1, 128>}, {pipeline_mode = #tpu.pipeline_mode<synchronous>, transform_indices = @transform_2, window_bounds = array<i64: 1, 128>}, {transform_indices = @transform_3, window_bounds = array<i64: 128, 128>}]} {
    %c0 = arith.constant 0 : index
    %c0_0 = arith.constant 0 : index
    %0 = vector.load %arg1[%c0, %c0_0] : memref<128x128xf32, #tpu.memory_space<vmem>>, vector<128x128xf32>
    %cst = arith.constant dense<0.000000e+00> : vector<128xf32>
    %1 = vector.multi_reduction <add>, %0, %cst [1] : vector<128x128xf32> to vector<128xf32>
    %2 = vector.shape_cast %1 : vector<128xf32> to vector<128x1xf32>
    %cst_1 = arith.constant 1.280000e+02 : f32
    %3 = vector.broadcast %cst_1 : f32 to vector<128x1xf32>
    %4 = arith.divf %2, %3 : vector<128x1xf32>
    %5 = vector.broadcast %4 : vector<128x1xf32> to vector<128x128xf32>
    %6 = arith.subf %0, %5 : vector<128x128xf32>
    %7 = arith.mulf %6, %6 : vector<128x128xf32>
    %cst_2 = arith.constant dense<0.000000e+00> : vector<128xf32>
    %8 = vector.multi_reduction <add>, %7, %cst_2 [1] : vector<128x128xf32> to vector<128xf32>
    %9 = vector.shape_cast %8 : vector<128xf32> to vector<128x1xf32>
    %cst_3 = arith.constant 1.280000e+02 : f32
    %10 = vector.broadcast %cst_3 : f32 to vector<128x1xf32>
    %11 = arith.divf %9, %10 : vector<128x1xf32>
    %cst_4 = arith.constant 9.99999974E-6 : f32
    %12 = vector.broadcast %cst_4 : f32 to vector<128x1xf32>
    %13 = arith.addf %11, %12 : vector<128x1xf32>
    %14 = math.rsqrt %13 : vector<128x1xf32>
    %c0_5 = arith.constant 0 : index
    %c0_6 = arith.constant 0 : index
    %15 = vector.load %arg2[%c0_5, %c0_6] : memref<1x128xf32, #tpu.memory_space<vmem>>, vector<1x128xf32>
    %c0_7 = arith.constant 0 : index
    %c0_8 = arith.constant 0 : index
    %16 = vector.load %arg3[%c0_7, %c0_8] : memref<1x128xf32, #tpu.memory_space<vmem>>, vector<1x128xf32>
    %17 = vector.broadcast %14 : vector<128x1xf32> to vector<128x128xf32>
    %18 = arith.mulf %6, %17 : vector<128x128xf32>
    %19 = vector.broadcast %15 : vector<1x128xf32> to vector<128x128xf32>
    %20 = arith.mulf %18, %19 : vector<128x128xf32>
    %21 = vector.broadcast %16 : vector<1x128xf32> to vector<128x128xf32>
    %22 = arith.addf %20, %21 : vector<128x128xf32>
    %c0_9 = arith.constant 0 : index
    %c0_10 = arith.constant 0 : index
    %23 = vector.load %arg4[%c0_9, %c0_10] : memref<128x128xf32, #tpu.memory_space<vmem>>, vector<128x128xf32>
    tpu.vector_store %arg4[%c0_9, %c0_10], %22 {strides = array<i32>} : memref<128x128xf32, #tpu.memory_space<vmem>>, vector<128x128xf32>,
    return
  }
  func.func @transform_0(%arg0: i32) -> (i32, i32) {
    %c0_i32 = arith.constant 0 : i32
    %c0_i32_0 = arith.constant 0 : i32
    return %arg0, %c0_i32 : i32, i32
  }
  func.func @transform_1(%arg0: i32) -> (i32, i32) {
    %c0_i32 = arith.constant 0 : i32
    %c0_i32_0 = arith.constant 0 : i32
    %c0_i32_1 = arith.constant 0 : i32
    return %c0_i32, %c0_i32_0 : i32, i32
  }
  func.func @transform_2(%arg0: i32) -> (i32, i32) {
    %c0_i32 = arith.constant 0 : i32
    %c0_i32_0 = arith.constant 0 : i32
    %c0_i32_1 = arith.constant 0 : i32
    return %c0_i32, %c0_i32_0 : i32, i32
  }
  func.func @transform_3(%arg0: i32) -> (i32, i32) {
    %c0_i32 = arith.constant 0 : i32
    %c0_i32_0 = arith.constant 0 : i32
    return %arg0, %c0_i32 : i32, i32
  }
}

</mosaic_0001>

<bundles_post_ra>
// kernel: tpu_custom_call.1
= control target key start
LH: loop header
LB: loop body
LE: loop exit
PB: predicated region body
PF: predicated region fallthrough
CT: control target
= control target key end

     0   :  { %8 = vsyncpa [#allocation3], 0  ;;  %s954_s0 = inlined_call_operand.hbm [shape: f32[128,128], index: 0, kind: input, shape index: {}]   ;;  %s955_s1 = inlined_call_operand.hbm [shape: f32[1,128], index: 1, kind: input, shape index: {}]   ;;  %s956_s2 = inlined_call_operand.vmem [shape: f32[1,128], index: 2, kind: input, shape index: {}]   ;;  %s957_s3 = inlined_call_operand.hbm [shape: f32[128,128], index: 3, kind: output, shape index: {}]  }
   0x1   :  { %9 = vsyncpa [#allocation6], 0 }
   0x2   :  { %10 = vsyncpa [#allocation4], 0  ;;  %s15_s14 = sshll.u32 %s954_s0, 4  ;;  %s584_s15 = smov [#allocation2]   ;;  %s16_s14 = int_to_ptr.hbm [resolvable:$true] %s15_s14 }
   0x3   :  { %s17_s16 = sshll.u32 %s584_s15, 4  ;;  %s29_s19 = sshll.u32 %s955_s1, 4  ;;  %s18_s16 = int_to_ptr.vmem [resolvable:$true] %s17_s16  ;;  %s30_s19 = int_to_ptr.hbm [resolvable:$true] %s29_s19 }
   0x4   :  { %s585_s20 = smov 128   ;;  %s586_s21 = smov 8  }
   0x5   :  { %23 = dma.hbm_to_vmem [thread:$0]  %s16_s14, 2048, %s18_s16, [#allocation3], %s585_s20, %s585_s20, %s586_s21  }
   0x6   :  { %s587_s22 = smov [#allocation5]  }
   0x7   :  { %s31_s23 = sshll.u32 %s587_s22, 4  ;;  %s32_s23 = int_to_ptr.vmem [resolvable:$true] %s31_s23 }
   0x8   :  { %34 = dma.hbm_to_vmem [thread:$0]  %s30_s19, 16, %s32_s23, [#allocation6]  }
   0x9   :  { %578 = dma.done.wait [#allocation3], 2048  }
   0xa   :  { %579 = vsyncadd [#allocation3], 4294965248 }
   0xb   :  { %580 = dma.done.wait [#allocation6], 16  }
   0xc   :  { %581 = vsyncadd [#allocation6], 4294967280  ;;  %v619_v0 = vld [vmem:[#allocation2 + $0x20] sm:$0xff]  ;;  %v47_v1 = vld [vmem:[#allocation2 + $0x10] sm:$0xff]  ;;  %v588_v16 = vmov 128.0   ;;  %s450_s27 = sshll.u32 %s957_s3, 4  ;;  %s451_s27 = int_to_ptr.hbm [resolvable:$true] %s450_s27 }
   0xd   :  { %v45_v2 = vld [vmem:[#allocation2] sm:$0xff]  ;;  %69 = vadd.xlane.f32.xlu2 %v619_v0  ;;  %65 = vadd.xlane.f32.xlu1 %v47_v1  ;;  %v50_v3 = vld [vmem:[#allocation2 + $0x28] sm:$0xff]  ;;  %v48_v4 = vld [vmem:[#allocation2 + $0x18] sm:$0xff]  ;;  %472 = vrcp.f32 %v588_v16 }
   0xe   :  { %61 = vadd.xlane.f32.xlu0 %v45_v2  ;;  %v46_v5 = vld [vmem:[#allocation2 + $0x8] sm:$0xff]  ;;  %v53_v6 = vld [vmem:[#allocation2 + $0x40] sm:$0xff]  ;;  %v622_v7 = vld [vmem:[#allocation2 + $0x38] sm:$0xff] }
   0xf   :  { %v51_v8 = vld [vmem:[#allocation2 + $0x30] sm:$0xff]  ;;  %v625_v9 = vld [vmem:[#allocation2 + $0x58] sm:$0xff]  ;;  %v629_v11 = vld [vmem:[#allocation2 + $0x48] sm:$0xff] }
  0x10   :  { %v627_v10 = vld [vmem:[#allocation2 + $0x50] sm:$0xff]  ;;  %v636_v13 = vld [vmem:[#allocation2 + $0x68] sm:$0xff]  ;;  %v638_v14 = vld [vmem:[#allocation2 + $0x60] sm:$0xff] }
  0x11   :  { %v634_v12 = vld [vmem:[#allocation2 + $0x70] sm:$0xff]  ;;  %v643_v15 = vld [vmem:[#allocation2 + $0x78] sm:$0xff] }
  0x13   :  { %v473_v17 = vpop.eup %472 }
  0x14   :  { %v94_v18 = vmul.f32 128.0, %v473_v17  ;;  %vm98_vm0 = vweird.f32 %v473_v17 }
  0x15   :  { %71 = vadd.xlane.f32.xlu2 %v50_v3  ;;  %67 = vadd.xlane.f32.xlu1 %v48_v4 }
  0x16   :  { %63 = vadd.xlane.f32.xlu0 %v46_v5  ;;  %v95_v19 = vsub.f32 1.0, %v94_v18 }
  0x18   :  { %v96_v20 = vmul.f32 %v473_v17, %v95_v19 }
  0x1a   :  { %v97_v21 = vadd.f32 %v473_v17, %v96_v20 }
  0x1c   :  { %v646_v22 = vsel %vm98_vm0, %v473_v17, %v97_v21 }
  0x1d   :  { %77 = vadd.xlane.f32.xlu2 %v53_v6  ;;  %75 = vadd.xlane.f32.xlu1 %v622_v7 }
  0x1e   :  { %73 = vadd.xlane.f32.xlu0 %v51_v8 }
  0x25   :  { %83 = vadd.xlane.f32.xlu2 %v625_v9  ;;  %81 = vadd.xlane.f32.xlu1 %v627_v10 }
  0x26   :  { %79 = vadd.xlane.f32.xlu0 %v629_v11 }
  0x2d   :  { %89 = vadd.xlane.f32.xlu2 %v634_v12  ;;  %87 = vadd.xlane.f32.xlu1 %v636_v13 }
  0x2e   :  { %85 = vadd.xlane.f32.xlu0 %v638_v14 }
  0x36   :  { %91 = vadd.xlane.f32.xlu0 %v643_v15 }
  0x80   :  { %v70_v23 = vpop.xlane.xlu2 %69  ;;  %v66_v24 = vpop.xlane.xlu1 %65 }
  0x81   :  { %v102_v25 = vmul.f32 %v646_v22, %v66_v24  ;;  %v62_v26 = vpop.xlane.xlu0 %61  ;;  %v104_v43 = vmul.f32 %v646_v22, %v70_v23 }
  0x82   :  { %v100_v27 = vmul.f32 %v646_v22, %v62_v26 }
  0x83   :  { %v650_v28 = vsub.f32 %v47_v1, %v102_v25  ;;  %v676_v49 = vsub.f32 %v619_v0, %v104_v43 }
  0x84   :  { %v652_v29 = vsub.f32 %v45_v2, %v100_v27 }
  0x85   :  { %v134_v30 = vmul.f32 %v650_v28, %v650_v28  ;;  %v136_v55 = vmul.f32 %v676_v49, %v676_v49 }
  0x86   :  { %v132_v31 = vmul.f32 %v652_v29, %v652_v29 }
  0x87   :  { %152 = vadd.xlane.f32.xlu0 %v134_v30 }
  0x88   :  { %148 = vadd.xlane.f32.xlu1 %v132_v31  ;;  %v72_v32 = vpop.xlane.xlu2 %71  ;;  %v68_v33 = vpop.xlane.xlu1 %67 }
  0x89   :  { %v105_v34 = vmul.f32 %v646_v22, %v72_v32  ;;  %v103_v35 = vmul.f32 %v646_v22, %v68_v33  ;;  %v64_v36 = vpop.xlane.xlu0 %63 }
  0x8a   :  { %v101_v37 = vmul.f32 %v646_v22, %v64_v36 }
  0x8b   :  { %v661_v38 = vsub.f32 %v50_v3, %v105_v34  ;;  %v663_v39 = vsub.f32 %v48_v4, %v103_v35 }
  0x8c   :  { %v665_v40 = vsub.f32 %v46_v5, %v101_v37 }
  0x8d   :  { %v137_v41 = vmul.f32 %v661_v38, %v661_v38  ;;  %v135_v42 = vmul.f32 %v663_v39, %v663_v39 }
  0x8e   :  { %v133_v44 = vmul.f32 %v665_v40, %v665_v40 }
  0x8f   :  { %158 = vadd.xlane.f32.xlu0 %v137_v41 }
  0x90   :  { %154 = vadd.xlane.f32.xlu1 %v135_v42  ;;  %150 = vadd.xlane.f32.xlu2 %v133_v44  ;;  %v78_v45 = vpop.xlane.xlu2 %77  ;;  %v76_v46 = vpop.xlane.xlu1 %75 }
  0x91   :  { %v108_v47 = vmul.f32 %v646_v22, %v78_v45  ;;  %v74_v48 = vpop.xlane.xlu0 %73  ;;  %v107_v53 = vmul.f32 %v646_v22, %v76_v46 }
  0x92   :  { %v106_v50 = vmul.f32 %v646_v22, %v74_v48 }
  0x93   :  { %v679_v51 = vsub.f32 %v53_v6, %v108_v47  ;;  %v691_v58 = vsub.f32 %v622_v7, %v107_v53 }
  0x94   :  { %v681_v52 = vsub.f32 %v51_v8, %v106_v50 }
  0x95   :  { %v140_v54 = vmul.f32 %v679_v51, %v679_v51  ;;  %v139_v1 = vmul.f32 %v691_v58, %v691_v58 }
  0x96   :  { %v138_v56 = vmul.f32 %v681_v52, %v681_v52 }
  0x97   :  { %164 = vadd.xlane.f32.xlu0 %v140_v54 }
  0x98   :  { %156 = vadd.xlane.f32.xlu2 %v136_v55  ;;  %160 = vadd.xlane.f32.xlu1 %v138_v56  ;;  %v84_v57 = vpop.xlane.xlu2 %83  ;;  %v82_v59 = vpop.xlane.xlu1 %81 }
  0x99   :  { %v111_v60 = vmul.f32 %v646_v22, %v84_v57  ;;  %v80_v61 = vpop.xlane.xlu0 %79  ;;  %v110_v2 = vmul.f32 %v646_v22, %v82_v59 }
  0x9a   :  { %v109_v62 = vmul.f32 %v646_v22, %v80_v61 }
  0x9b   :  { %v696_v63 = vsub.f32 %v625_v9, %v111_v60  ;;  %v709_v6 = vsub.f32 %v627_v10, %v110_v2 }
  0x9c   :  { %v699_v0 = vsub.f32 %v629_v11, %v109_v62 }
  0x9d   :  { %v143_v3 = vmul.f32 %v696_v63, %v696_v63  ;;  %v142_v18 = vmul.f32 %v709_v6, %v709_v6 }
  0x9e   :  { %v141_v4 = vmul.f32 %v699_v0, %v699_v0 }
  0x9f   :  { %170 = vadd.xlane.f32.xlu0 %v143_v3 }
  0xa0   :  { %162 = vadd.xlane.f32.xlu2 %v139_v1  ;;  %166 = vadd.xlane.f32.xlu1 %v141_v4  ;;  %v90_v5 = vpop.xlane.xlu2 %89  ;;  %v88_v9 = vpop.xlane.xlu1 %87 }
  0xa1   :  { %v114_v7 = vmul.f32 %v646_v22, %v90_v5  ;;  %v86_v8 = vpop.xlane.xlu0 %85  ;;  %v113_v19 = vmul.f32 %v646_v22, %v88_v9  ;;  %v764_v9 = vld [vmem:[#allocation5] ss:$0 sm:$0xff] }
  0xa2   :  { %v112_v11 = vmul.f32 %v646_v22, %v86_v8 }
  0xa3   :  { %v714_v16 = vsub.f32 %v634_v12, %v114_v7  ;;  %v727_v12 = vsub.f32 %v636_v13, %v113_v19 }
  0xa4   :  { %v717_v17 = vsub.f32 %v638_v14, %v112_v11 }
  0xa5   :  { %v146_v10 = vmul.f32 %v714_v16, %v714_v16  ;;  %v145_v24 = vmul.f32 %v727_v12, %v727_v12 }
  0xa6   :  { %v144_v20 = vmul.f32 %v717_v17, %v717_v17 }
  0xa7   :  { %176 = vadd.xlane.f32.xlu0 %v146_v10 }
  0xa8   :  { %168 = vadd.xlane.f32.xlu2 %v142_v18  ;;  %172 = vadd.xlane.f32.xlu1 %v144_v20 }
  0xa9   :  { %v92_v21 = vpop.xlane.xlu0 %91 }
  0xaa   :  { %v115_v14 = vmul.f32 %v646_v22, %v92_v21 }
  0xac   :  { %v731_v23 = vsub.f32 %v643_v15, %v115_v14 }
  0xae   :  { %v147_v25 = vmul.f32 %v731_v23, %v731_v23 }
  0xb0   :  { %174 = vadd.xlane.f32.xlu2 %v145_v24  ;;  %178 = vadd.xlane.f32.xlu1 %v147_v25  ;;  %v779_v24 = vld [vmem:[%s956_s2] ss:$0 sm:$0xff]  ;;  %s589_s2 = smov [#allocation7]  }
  0xb1   :  { %s448_s24 = sshll.u32 %s589_s2, 4  ;;  %s449_s24 = int_to_ptr.vmem [resolvable:$true] %s448_s24 }
  0xfa   :  { %v153_v26 = vpop.xlane.xlu0 %152 }
  0xfb   :  { %v149_v27 = vpop.xlane.xlu1 %148  ;;  %v182_v30 = vmul.f32 %v153_v26, %v646_v22 }
  0xfc   :  { %v180_v13 = vmul.f32 %v149_v27, %v646_v22 }
  0xfd   :  { %v198_v31 = vadd.f32 1e-05, %v182_v30 }
  0xfe   :  { %v196_v32 = vadd.f32 1e-05, %v180_v13 }
  0xff   :  { %474 = vrsqrt.f32 %v198_v31  ;;  %vm238_vm3 = vweird.f32 %v198_v31 }
 0x100   :  { %476 = vrsqrt.f32 %v196_v32  ;;  %vm218_vm4 = vweird.f32 %v196_v32 }
 0x102   :  { %v159_v15 = vpop.xlane.xlu0 %158 }
 0x103   :  { %v155_v33 = vpop.xlane.xlu1 %154  ;;  %v151_v34 = vpop.xlane.xlu2 %150  ;;  %v185_v35 = vmul.f32 %v159_v15, %v646_v22 }
 0x104   :  { %v183_v36 = vmul.f32 %v155_v33, %v646_v22  ;;  %v181_v37 = vmul.f32 %v151_v34, %v646_v22 }
 0x105   :  { %v475_v41 = vpop.eup %474  ;;  %v742_v42 = vadd.f32 1e-05, %v185_v35 }
 0x106   :  { %v477_v43 = vpop.eup %476  ;;  %v233_v44 = vmul.f32 %v475_v41, %v198_v31  ;;  %v744_v45 = vadd.f32 1e-05, %v183_v36  ;;  %v746_v46 = vadd.f32 1e-05, %v181_v37  ;;  %vm239_vm1 = vweird.f32 %v475_v41 }
 0x107   :  { %v213_v47 = vmul.f32 %v477_v43, %v196_v32  ;;  %478 = vrsqrt.f32 %v742_v42  ;;  %vm219_vm2 = vweird.f32 %v477_v43  ;;  %vm240_vm5 = vmor %vm238_vm3, %vm239_vm1  ;;  %vm268_vm7 = vweird.f32 %v742_v42 }
 0x108   :  { %v234_v48 = vmul.f32 %v475_v41, %v233_v44  ;;  %480 = vrsqrt.f32 %v744_v45  ;;  %vm220_vm6 = vmor %vm218_vm4, %vm219_vm2  ;;  %vm248_vm11 = vweird.f32 %v744_v45  ;;  %vm228_vm12 = vweird.f32 %v746_v46 }
 0x109   :  { %v214_v50 = vmul.f32 %v477_v43, %v213_v47  ;;  %482 = vrsqrt.f32 %v746_v46 }
 0x10a   :  { %v235_v53 = vmul.f32 0.5, %v234_v48  ;;  %v165_v54 = vpop.xlane.xlu0 %164 }
 0x10b   :  { %v215_v55 = vmul.f32 0.5, %v214_v50  ;;  %v157_v56 = vpop.xlane.xlu2 %156  ;;  %v161_v57 = vpop.xlane.xlu1 %160  ;;  %v188_v62 = vmul.f32 %v165_v54, %v646_v22 }
 0x10c   :  { %v236_v59 = vsub.f32 1.5, %v235_v53  ;;  %v184_v60 = vmul.f32 %v157_v56, %v646_v22  ;;  %v186_v61 = vmul.f32 %v161_v57, %v646_v22 }
 0x10d   :  { %v754_v1 = vpop.eup %478  ;;  %v216_v2 = vsub.f32 1.5, %v215_v55  ;;  %v774_v14 = vadd.f32 1e-05, %v188_v62 }
 0x10e   :  { %v756_v3 = vpop.eup %480  ;;  %v237_v4 = vmul.f32 %v475_v41, %v236_v59  ;;  %v263_v5 = vmul.f32 %v754_v1, %v742_v42  ;;  %v760_v7 = vadd.f32 1e-05, %v184_v60  ;;  %v769_v19 = vadd.f32 1e-05, %v186_v61 }
 0x10f   :  { %v762_v8 = vpop.eup %482  ;;  %v217_v11 = vmul.f32 %v477_v43, %v216_v2  ;;  %v243_v18 = vmul.f32 %v756_v3, %v744_v45  ;;  %vm269_vm8 = vweird.f32 %v754_v1  ;;  %vm249_vm9 = vweird.f32 %v756_v3 }
 0x110   :  { %v241_v10 = vsel %vm240_vm5, %v475_v41, %v237_v4  ;;  %v223_v20 = vmul.f32 %v762_v8, %v746_v46  ;;  %v264_v21 = vmul.f32 %v754_v1, %v263_v5  ;;  %484 = vrsqrt.f32 %v760_v7  ;;  %vm270_vm13 = vmor %vm268_vm7, %vm269_vm8 }
 0x111   :  { %v221_v25 = vsel %vm220_vm6, %v477_v43, %v217_v11  ;;  %v376_v26 = vmul.f32 %v241_v10, %v650_v28  ;;  %v244_v27 = vmul.f32 %v756_v3, %v243_v18  ;;  %486 = vrsqrt.f32 %v769_v19  ;;  %vm250_vm14 = vmor %vm248_vm11, %vm249_vm9 }
 0x112   :  { %v374_v30 = vmul.f32 %v221_v25, %v652_v29  ;;  %v224_v13 = vmul.f32 %v762_v8, %v223_v20  ;;  %v265_v31 = vmul.f32 0.5, %v264_v21  ;;  %488 = vrsqrt.f32 %v774_v14  ;;  %v171_v48 = vpop.xlane.xlu0 %170 }
 0x113   :  { %v395_v32 = vmul.f32 %v764_v9, %v376_v26  ;;  %v245_v15 = vmul.f32 0.5, %v244_v27  ;;  %v163_v33 = vpop.xlane.xlu2 %162  ;;  %v167_v41 = vpop.xlane.xlu1 %166  ;;  %vm229_vm10 = vweird.f32 %v762_v8  ;;  %vm258_vm15 = vweird.f32 %v760_v7 }
 0x114   :  { %v393_v28 = vmul.f32 %v764_v9, %v374_v30  ;;  %v225_v34 = vmul.f32 0.5, %v224_v13  ;;  %v266_v35 = vsub.f32 1.5, %v265_v31  ;;  %v187_v37 = vmul.f32 %v163_v33, %v646_v22  ;;  %vm230_vm0 = vmor %vm228_vm12, %vm229_vm10 }
 0x115   :  { %v414_v29 = vadd.f32 %v779_v24, %v395_v32  ;;  %v246_v36 = vsub.f32 1.5, %v245_v15  ;;  %v189_v46 = vmul.f32 %v167_v41, %v646_v22  ;;  %v191_v60 = vmul.f32 %v171_v48, %v646_v22 }
 0x116   :  { %v412_v43 = vadd.f32 %v779_v24, %v393_v28  ;;  %v226_v44 = vsub.f32 1.5, %v225_v34  ;;  %v267_v47 = vmul.f32 %v754_v1, %v266_v35  ;;  %v798_v50 = vpop.eup %484  ;;  %v807_v54 = vadd.f32 1e-05, %v187_v37 }
 0x117   :  { %430 = vst [vmem:[#allocation7 + $0x10] sm:$0xff] %v414_v29  ;;  %v247_v53 = vmul.f32 %v756_v3, %v246_v36  ;;  %v253_v45 = vmul.f32 %v798_v50, %v760_v7  ;;  %v817_v57 = vpop.eup %486  ;;  %vm278_vm1 = vweird.f32 %v769_v19  ;;  %vm259_vm2 = vweird.f32 %v798_v50 }
 0x118   :  { %428 = vst [vmem:[#allocation7] sm:$0xff] %v412_v43  ;;  %v227_v55 = vmul.f32 %v762_v8, %v226_v44  ;;  %v271_v56 = vsel %vm270_vm13, %v754_v1, %v267_v47  ;;  %490 = vrsqrt.f32 %v807_v54  ;;  %v489_v61 = vpop.eup %488  ;;  %v273_v4 = vmul.f32 %v817_v57, %v769_v19  ;;  %vm260_vm5 = vmor %vm258_vm15, %vm259_vm2 }
 0x119   :  { %v251_v42 = vsel %vm250_vm14, %v756_v3, %v247_v53  ;;  %v379_v59 = vmul.f32 %v271_v56, %v661_v38  ;;  %v254_v2 = vmul.f32 %v798_v50, %v253_v45  ;;  %v293_v38 = vmul.f32 %v489_v61, %v774_v14 }
 0x11a   :  { %v377_v62 = vmul.f32 %v251_v42, %v663_v39  ;;  %v231_v1 = vsel %vm230_vm0, %v762_v8, %v227_v55  ;;  %v274_v39 = vmul.f32 %v817_v57, %v273_v4  ;;  %v842_v30 = vadd.f32 1e-05, %v191_v60  ;;  %v177_v36 = vpop.xlane.xlu0 %176 }
 0x11b   :  { %v375_v3 = vmul.f32 %v231_v1, %v665_v40  ;;  %v398_v5 = vmul.f32 %v764_v9, %v379_v59  ;;  %v169_v11 = vpop.xlane.xlu2 %168  ;;  %v255_v10 = vmul.f32 0.5, %v254_v2  ;;  %v294_v21 = vmul.f32 %v489_v61, %v293_v38  ;;  %v173_v15 = vpop.xlane.xlu1 %172 }
 0x11c   :  { %v396_v18 = vmul.f32 %v764_v9, %v377_v62  ;;  %v839_v40 = vadd.f32 1e-05, %v189_v46  ;;  %v275_v27 = vmul.f32 0.5, %v274_v39  ;;  %vm298_vm3 = vweird.f32 %v774_v14 }
 0x11d   :  { %v394_v8 = vmul.f32 %v764_v9, %v375_v3  ;;  %v417_v20 = vadd.f32 %v779_v24, %v398_v5  ;;  %v256_v26 = vsub.f32 1.5, %v255_v10  ;;  %v295_v32 = vmul.f32 0.5, %v294_v21 }
 0x11e   :  { %v415_v25 = vadd.f32 %v779_v24, %v396_v18  ;;  %v844_v13 = vpop.eup %490  ;;  %492 = vrsqrt.f32 %v839_v40  ;;  %v276_v28 = vsub.f32 1.5, %v275_v27  ;;  %vm279_vm4 = vweird.f32 %v817_v57 }
 0x11f   :  { %v413_v31 = vadd.f32 %v779_v24, %v394_v8  ;;  %433 = vst [vmem:[#allocation7 + $0x28] sm:$0xff] %v417_v20  ;;  %v257_v33 = vmul.f32 %v798_v50, %v256_v26  ;;  %v283_v34 = vmul.f32 %v844_v13, %v807_v54  ;;  %v296_v35 = vsub.f32 1.5, %v295_v32  ;;  %vm280_vm7 = vmor %vm278_vm1, %vm279_vm4 }
 0x120   :  { %431 = vst [vmem:[#allocation7 + $0x18] sm:$0xff] %v415_v25  ;;  %vm299_vm6 = vweird.f32 %v489_v61  ;;  %494 = vrsqrt.f32 %v842_v30  ;;  %v190_v29 = vmul.f32 %v169_v11, %v646_v22  ;;  %v277_v41 = vmul.f32 %v817_v57, %v276_v28 }
 0x121   :  { %429 = vst [vmem:[#allocation7 + $0x8] sm:$0xff] %v413_v31  ;;  %v261_v37 = vsel %vm260_vm5, %v798_v50, %v257_v33  ;;  %v284_v43 = vmul.f32 %v844_v13, %v283_v34  ;;  %v192_v44 = vmul.f32 %v173_v15, %v646_v22  ;;  %v297_v7 = vmul.f32 %v489_v61, %v296_v35  ;;  %vm300_vm9 = vmor %vm298_vm3, %vm299_vm6 }
 0x122   :  { %v378_v47 = vmul.f32 %v261_v37, %v676_v49  ;;  %vm288_vm8 = vweird.f32 %v807_v54  ;;  %v867_v48 = vadd.f32 1e-05, %v190_v29  ;;  %v281_v53 = vsel %vm280_vm7, %v817_v57, %v277_v41 }
 0x123   :  { %v285_v50 = vmul.f32 0.5, %v284_v43  ;;  %v872_v55 = vadd.f32 1e-05, %v192_v44  ;;  %v194_v56 = vmul.f32 %v177_v36, %v646_v22  ;;  %v175_v45 = vpop.xlane.xlu2 %174  ;;  %v380_v46 = vmul.f32 %v281_v53, %v681_v52  ;;  %v179_v39 = vpop.xlane.xlu1 %178 }
 0x124   :  { %v493_v49 = vpop.eup %492  ;;  %v397_v19 = vmul.f32 %v764_v9, %v378_v47  ;;  %v301_v42 = vsel %vm300_vm9, %v489_v61, %v297_v7  ;;  %496 = vrsqrt.f32 %v867_v48  ;;  %vm289_vm10 = vweird.f32 %v844_v13 }
 0x125   :  { %v382_v59 = vmul.f32 %v301_v42, %v679_v51  ;;  %v286_v57 = vsub.f32 1.5, %v285_v50  ;;  %v303_v14 = vmul.f32 %v493_v49, %v839_v40  ;;  %v399_v1 = vmul.f32 %v764_v9, %v380_v46  ;;  %vm290_vm11 = vmor %vm288_vm8, %vm289_vm10 }
 0x126   :  { %v495_v60 = vpop.eup %494  ;;  %v416_v62 = vadd.f32 %v779_v24, %v397_v19  ;;  %498 = vrsqrt.f32 %v872_v55  ;;  %v193_v2 = vmul.f32 %v175_v45, %v646_v22  ;;  %vm308_vm12 = vweird.f32 %v839_v40 }
 0x127   :  { %v401_v52 = vmul.f32 %v764_v9, %v382_v59  ;;  %v287_v61 = vmul.f32 %v844_v13, %v286_v57  ;;  %v304_v4 = vmul.f32 %v493_v49, %v303_v14  ;;  %v323_v51 = vmul.f32 %v495_v60, %v842_v30 }
 0x128   :  { %432 = vst [vmem:[#allocation7 + $0x20] sm:$0xff] %v416_v62  ;;  %v418_v3 = vadd.f32 %v779_v24, %v399_v1  ;;  %v892_v5 = vadd.f32 1e-05, %v194_v56  ;;  %vm328_vm13 = vweird.f32 %v842_v30  ;;  %v899_v54 = vadd.f32 1e-05, %v193_v2 }
 0x129   :  { %v420_v38 = vadd.f32 %v779_v24, %v401_v52  ;;  %v291_v11 = vsel %vm290_vm11, %v844_v13, %v287_v61  ;;  %v305_v18 = vmul.f32 0.5, %v304_v4  ;;  %v324_v10 = vmul.f32 %v495_v60, %v323_v51 }
 0x12a   :  { %v497_v8 = vpop.eup %496  ;;  %434 = vst [vmem:[#allocation7 + $0x30] sm:$0xff] %v418_v3  ;;  %v381_v20 = vmul.f32 %v291_v11, %v691_v58  ;;  %500 = vrsqrt.f32 %v892_v5  ;;  %vm309_vm14 = vweird.f32 %v493_v49  ;;  %vm329_vm15 = vweird.f32 %v495_v60 }
 0x12b   :  { %436 = vst [vmem:[#allocation7 + $0x40] sm:$0xff] %v420_v38  ;;  %v306_v21 = vsub.f32 1.5, %v305_v18  ;;  %v325_v25 = vmul.f32 0.5, %v324_v10  ;;  %v313_v26 = vmul.f32 %v497_v8, %v867_v48  ;;  %502 = vrsqrt.f32 %v899_v54  ;;  %vm310_vm0 = vmor %vm308_vm12, %vm309_vm14 }
 0x12c   :  { %v499_v27 = vpop.eup %498  ;;  %v400_v13 = vmul.f32 %v764_v9, %v381_v20  ;;  %v195_v58 = vmul.f32 %v179_v39, %v646_v22  ;;  %vm330_vm1 = vmor %vm328_vm13, %vm329_vm15  ;;  %vm319_vm2 = vweird.f32 %v497_v8  ;;  %vm318_vm3 = vweird.f32 %v867_v48 }
 0x12d   :  { %v307_v31 = vmul.f32 %v493_v49, %v306_v21  ;;  %v326_v32 = vsub.f32 1.5, %v325_v25  ;;  %v314_v15 = vmul.f32 %v497_v8, %v313_v26  ;;  %v333_v33 = vmul.f32 %v499_v27, %v872_v55  ;;  %vm320_vm5 = vmor %vm318_vm3, %vm319_vm2 }
 0x12e   :  { %v419_v28 = vadd.f32 %v779_v24, %v400_v13  ;;  %v909_v34 = vadd.f32 1e-05, %v195_v58  ;;  %vm339_vm4 = vweird.f32 %v499_v27  ;;  %vm338_vm6 = vweird.f32 %v872_v55 }
 0x12f   :  { %v311_v35 = vsel %vm310_vm0, %v493_v49, %v307_v31  ;;  %v327_v29 = vmul.f32 %v495_v60, %v326_v32  ;;  %v315_v36 = vmul.f32 0.5, %v314_v15  ;;  %v334_v37 = vmul.f32 %v499_v27, %v333_v33  ;;  %vm340_vm7 = vmor %vm338_vm6, %vm339_vm4 }
 0x130   :  { %v501_v41 = vpop.eup %500  ;;  %435 = vst [vmem:[#allocation7 + $0x38] sm:$0xff] %v419_v28  ;;  %v383_v22 = vmul.f32 %v311_v35, %v699_v0  ;;  %504 = vrsqrt.f32 %v909_v34  ;;  %vm358_vm8 = vweird.f32 %v892_v5  ;;  %vm348_vm12 = vweird.f32 %v899_v54 }
 0x131   :  { %v331_v43 = vsel %vm330_vm1, %v495_v60, %v327_v29  ;;  %v316_v40 = vsub.f32 1.5, %v315_v36  ;;  %v335_v44 = vmul.f32 0.5, %v334_v37  ;;  %v353_v47 = vmul.f32 %v501_v41, %v892_v5  ;;  %v503_v7 = vpop.eup %502 }
 0x132   :  { %v402_v53 = vmul.f32 %v764_v9, %v383_v22  ;;  %v385_v50 = vmul.f32 %v331_v43, %v696_v63  ;;  %v343_v45 = vmul.f32 %v503_v7, %v899_v54  ;;  %vm359_vm9 = vweird.f32 %v501_v41 }
 0x133   :  { %v317_v0 = vmul.f32 %v497_v8, %v316_v40  ;;  %v336_v56 = vsub.f32 1.5, %v335_v44  ;;  %v354_v30 = vmul.f32 %v501_v41, %v353_v47  ;;  %vm349_vm10 = vweird.f32 %v503_v7  ;;  %vm360_vm11 = vmor %vm358_vm8, %vm359_vm9 }
 0x134   :  { %v421_v49 = vadd.f32 %v779_v24, %v402_v53  ;;  %v404_v19 = vmul.f32 %v764_v9, %v385_v50  ;;  %v344_v63 = vmul.f32 %v503_v7, %v343_v45  ;;  %vm350_vm13 = vmor %vm348_vm12, %vm349_vm10  ;;  %vm368_vm15 = vweird.f32 %v909_v34 }
 0x135   :  { %v321_v46 = vsel %vm320_vm5, %v497_v8, %v317_v0  ;;  %v337_v42 = vmul.f32 %v499_v27, %v336_v56  ;;  %v355_v59 = vmul.f32 0.5, %v354_v30 }
 0x136   :  { %v505_v57 = vpop.eup %504  ;;  %437 = vst [vmem:[#allocation7 + $0x48] sm:$0xff] %v421_v49  ;;  %v423_v48 = vadd.f32 %v779_v24, %v404_v19  ;;  %v384_v14 = vmul.f32 %v321_v46, %v709_v6  ;;  %v345_v1 = vmul.f32 0.5, %v344_v63 }
 0x137   :  { %v341_v60 = vsel %vm340_vm7, %v499_v27, %v337_v42  ;;  %v356_v62 = vsub.f32 1.5, %v355_v59  ;;  %v363_v55 = vmul.f32 %v505_v57, %v909_v34  ;;  %vm369_vm14 = vweird.f32 %v505_v57 }
 0x138   :  { %439 = vst [vmem:[#allocation7 + $0x58] sm:$0xff] %v423_v48  ;;  %v403_v2 = vmul.f32 %v764_v9, %v384_v14  ;;  %v386_v52 = vmul.f32 %v341_v60, %v717_v17  ;;  %v346_v4 = vsub.f32 1.5, %v345_v1  ;;  %vm370_vm0 = vmor %vm368_vm15, %vm369_vm14 }
 0x139   :  { %v357_v61 = vmul.f32 %v501_v41, %v356_v62  ;;  %v364_v51 = vmul.f32 %v505_v57, %v363_v55 }
 0x13a   :  { %v422_v6 = vadd.f32 %v779_v24, %v403_v2  ;;  %v405_v3 = vmul.f32 %v764_v9, %v386_v52  ;;  %v347_v11 = vmul.f32 %v503_v7, %v346_v4 }
 0x13b   :  { %v361_v38 = vsel %vm360_vm11, %v501_v41, %v357_v61  ;;  %v365_v18 = vmul.f32 0.5, %v364_v51 }
 0x13c   :  { %438 = vst [vmem:[#allocation7 + $0x50] sm:$0xff] %v422_v6  ;;  %v424_v10 = vadd.f32 %v779_v24, %v405_v3  ;;  %v388_v17 = vmul.f32 %v361_v38, %v714_v16  ;;  %v351_v39 = vsel %vm350_vm13, %v503_v7, %v347_v11 }
 0x13d   :  { %v366_v8 = vsub.f32 1.5, %v365_v18  ;;  %v387_v5 = vmul.f32 %v351_v39, %v727_v12 }
 0x13e   :  { %440 = vst [vmem:[#allocation7 + $0x60] sm:$0xff] %v424_v10  ;;  %v407_v20 = vmul.f32 %v764_v9, %v388_v17 }
 0x13f   :  { %v367_v21 = vmul.f32 %v505_v57, %v366_v8  ;;  %v406_v25 = vmul.f32 %v764_v9, %v387_v5 }
 0x140   :  { %v426_v54 = vadd.f32 %v779_v24, %v407_v20 }
 0x141   :  { %v371_v26 = vsel %vm370_vm0, %v505_v57, %v367_v21  ;;  %v425_v16 = vadd.f32 %v779_v24, %v406_v25 }
 0x142   :  { %442 = vst [vmem:[#allocation7 + $0x70] sm:$0xff] %v426_v54  ;;  %v389_v27 = vmul.f32 %v371_v26, %v731_v23 }
 0x143   :  { %441 = vst [vmem:[#allocation7 + $0x68] sm:$0xff] %v425_v16 }
 0x144   :  { %v408_v12 = vmul.f32 %v764_v9, %v389_v27 }
 0x146   :  { %v427_v13 = vadd.f32 %v779_v24, %v408_v12 }
 0x148   :  { %443 = vst [vmem:[#allocation7 + $0x78] sm:$0xff] %v427_v13 }
 0x149   :  { %456 = dma.vmem_to_hbm [thread:$0]  %s449_s24, 2048, %s451_s27, [#allocation4], %s585_s20, %s585_s20, %s586_s21  }
 0x14a   :  { %582 = dma.done.wait [#allocation4], 2048  }
 0x14b   :  { %583 = vsyncadd [#allocation4], 4294965248 }
 0x14c   :  { %461 = vsyncpa [#allocation3], 1 }
 0x14d   :  { %462 = vsyncpa [#allocation6], 1 }
 0x14e   :  { %463 = vsyncpa [#allocation4], 1 }

</bundles_post_ra>
